<compile_context>
chip_gen: v7x
topology: tpu7x:2x2x1
jax: 0.10.0
libtpu: 0.0.40
codegen_flags: <defaults>
</compile_context>

<pallas_src>
import jax
import jax.numpy as jnp
from jax.experimental import pallas as pl
from jax.experimental.pallas import tpu as pltpu

_LANE = 128


def _round_up(n, m):
    return ((n + m - 1) // m) * m


def _gru_gate_kernel(x_ref, y_ref, w_ref, b_ref, u_ref, ug_ref, out_ref):
    """One row-block of the GRU gate (feature dim padded to lane multiple).

    x_ref, y_ref : (R, Dp)     f32 inputs
    w_ref        : (Dp, 3*Dp)  bf16  [Wz | Wr | Wg]  (pre-transposed, padded)
    b_ref        : (1, Dp)     f32   bz (padded)
    u_ref        : (Dp, 2*Dp)  bf16  [Uz | Ur]
    ug_ref       : (Dp, Dp)    bf16  Ug
    out_ref      : (R, Dp)
    """
    Dp = x_ref.shape[-1]

    # Residual / elementwise path stays f32.
    x = x_ref[...].astype(jnp.float32)
    # MXU operands in bf16, f32 accumulation.
    x_bf = x_ref[...].astype(jnp.bfloat16)
    y_bf = y_ref[...].astype(jnp.bfloat16)

    # Fused gate projections: one wide matmul for y, one for x.
    wy = jnp.dot(y_bf, w_ref[...], preferred_element_type=jnp.float32)
    ux = jnp.dot(x_bf, u_ref[...], preferred_element_type=jnp.float32)

    # Slices are lane-aligned because Dp % 128 == 0.
    z = jax.nn.sigmoid(wy[:, :Dp] + ux[:, :Dp] + b_ref[...])
    r = jax.nn.sigmoid(wy[:, Dp:2 * Dp] + ux[:, Dp:2 * Dp])

    # (r * x) @ Ug is a dependent matmul; keep it separate.
    h_hat = jnp.tanh(
        wy[:, 2 * Dp:]
        + jnp.dot((r * x).astype(jnp.bfloat16), ug_ref[...],
                  preferred_element_type=jnp.float32))

    out_ref[...] = ((1.0 - z) * x + z * h_hat).astype(out_ref.dtype)


def prepare_params(params, d_model):
    """One-time weight prep: pad to lane multiple, fuse, cast to bf16.

    Hoisted out of the forward so the concat/cast HBM round trip is paid once.
    """
    dp = max(_LANE, _round_up(d_model, _LANE))
    pad_w = lambda w: jnp.pad(w, ((0, dp - d_model), (0, dp - d_model)))
    w_fused = jnp.concatenate(
        [pad_w(params["wz_t"]), pad_w(params["wr_t"]), pad_w(params["wg_t"])],
        axis=1).astype(jnp.bfloat16)
    u_fused = jnp.concatenate(
        [pad_w(params["uz_t"]), pad_w(params["ur_t"])],
        axis=1).astype(jnp.bfloat16)
    ug = pad_w(params["ug_t"]).astype(jnp.bfloat16)
    bz = jnp.pad(params["bz"], ((0, 0), (0, dp - d_model))).astype(jnp.float32)
    return {"w_fused": w_fused, "u_fused": u_fused, "ug": ug, "bz": bz,
            "d_model": d_model, "d_pad": dp}


def _pick_block_rows(n_rows, dp, vmem_cap):
    """Row-tile size: single step for small N, MXU-friendly divisor otherwise."""
    # Per-row VMEM: x,y double-buffered f32 + out double-buffered f32 +
    # generous allowance for f32 intermediates (wy, ux, z, r, h_hat, ...).
    per_row = (2 * 2 * 4 * dp) + (2 * 4 * dp) + (10 * 4 * dp)
    weights = 12 * dp * dp + 4 * dp          # single-buffered bf16 fused weights
    budget = max(vmem_cap - weights - (8 << 20), 1 << 20)
    cap = max(8, budget // per_row)
    if n_rows <= cap:
        return n_rows                         # one grid step, no row padding
    # Prefer MXU-tile multiples that divide N (no host-side row pad).
    for m in (512, 384, 256, 128, 64, 32, 16, 8):
        if m <= cap and n_rows % m == 0:
            return m
    return max(8, (cap // 8) * 8)


def gru_gate_forward(x, y, prepped, *, block_rows=None):
    """Apply the GRU gate to x, y of shape (..., d_model)."""
    d_model = prepped["d_model"]
    dp = prepped["d_pad"]
    assert x.shape == y.shape and x.shape[-1] == d_model

    xf = x.reshape(-1, d_model)
    yf = y.reshape(-1, d_model)
    n_rows = xf.shape[0]

    if dp != d_model:
        xf = jnp.pad(xf, ((0, 0), (0, dp - d_model)))
        yf = jnp.pad(yf, ((0, 0), (0, dp - d_model)))

    try:
        vmem_cap = int(pltpu.get_tpu_info().vmem_capacity_bytes)
    except Exception:
        vmem_cap = 64 << 20                   # conservative (v7x per-TC)

    if block_rows is None:
        block_rows = _pick_block_rows(n_rows, dp, vmem_cap)

    n_blocks = pl.cdiv(n_rows, block_rows)
    n_pad = n_blocks * block_rows
    if n_pad != n_rows:
        xf = jnp.pad(xf, ((0, n_pad - n_rows), (0, 0)))
        yf = jnp.pad(yf, ((0, n_pad - n_rows), (0, 0)))

    # Explicit VMEM limit: single-buffered weights + pipelined row tiles + headroom.
    weights_bytes = 12 * dp * dp + 4 * dp
    row_tile_bytes = block_rows * dp * 4
    vmem_limit = min(weights_bytes + 14 * row_tile_bytes + (16 << 20),
                     vmem_cap)

    cost = pl.CostEstimate(
        flops=2 * n_pad * 6 * dp * dp,
        transcendentals=3 * n_pad * dp,
        bytes_accessed=3 * n_pad * dp * 4 + weights_bytes,
    )

    row_spec = pl.BlockSpec((block_rows, dp), lambda i: (i, 0))
    # Constant-index weights: single-buffered, VMEM-resident across the grid.
    const = lambda shape: pl.BlockSpec(shape, lambda i: (0, 0),
                                       pipeline_mode=pl.Buffered(1))

    out = pl.pallas_call(
        _gru_gate_kernel,
        out_shape=jax.ShapeDtypeStruct((n_pad, dp), x.dtype),
        grid=(n_blocks,),
        in_specs=[
            row_spec,                  # x rows
            row_spec,                  # y rows
            const((dp, 3 * dp)),       # [Wz | Wr | Wg]
            const((1, dp)),            # bz
            const((dp, 2 * dp)),       # [Uz | Ur]
            const((dp, dp)),           # Ug
        ],
        out_specs=row_spec,
        compiler_params=pltpu.CompilerParams(
            dimension_semantics=("parallel",),
            vmem_limit_bytes=int(vmem_limit)),
        cost_estimate=cost,
    )(xf, yf, prepped["w_fused"], prepped["bz"], prepped["u_fused"],
      prepped["ug"])

    return out[:n_rows, :d_model].reshape(x.shape)


def gru_gate_reference(x, y, params):
    """Pure-JAX f32 reference mirroring the PyTorch forward exactly."""
    z = jax.nn.sigmoid(y @ params["wz_t"] + params["bz"] + x @ params["uz_t"])
    r = jax.nn.sigmoid(y @ params["wr_t"] + x @ params["ur_t"])
    h_hat = jnp.tanh(y @ params["wg_t"] + (r * x) @ params["ug_t"])
    return (1.0 - z) * x + z * h_hat


def init_params(key, d_model):
    ks = jax.random.split(key, 6)
    lin = lambda k: 0.1 * jax.random.normal(k, (d_model, d_model), jnp.float32)
    return {
        "wz_t": lin(ks[0]),
        "bz":   jnp.full((1, d_model), -2.0, jnp.float32),  # init_bias(): fill_(-2)
        "uz_t": lin(ks[1]),
        "wr_t": lin(ks[2]),
        "ur_t": lin(ks[3]),
        "wg_t": lin(ks[4]),
        "ug_t": lin(ks[5]),
    }


if __name__ == "__main__":
    B, L, d_model = 2, 8, 32

    key = jax.random.PRNGKey(0)
    kx, ky, kp = jax.random.split(key, 3)

    x = jax.random.normal(kx, (B, L, d_model), jnp.float32)
    y = jax.random.normal(ky, (B, L, d_model), jnp.float32)
    params = init_params(kp, d_model)

    # One-time weight fusion / padding / bf16 cast (hoisted out of the hot path).
    prepped = prepare_params(params, d_model)

    out = gru_gate_forward(x, y, prepped)
    out = jax.block_until_ready(out)

    ref = gru_gate_reference(x, y, params)
    assert out.shape == (B, L, d_model)
    # Tolerance accounts for bf16 MXU operands (f32 accumulation) in the kernel.
    assert jnp.allclose(out, ref, atol=2e-2, rtol=2e-2), "mismatch vs reference"

    print("KERNEL_OK")
</pallas_src>

<mosaic_0001>
module attributes {stable_mosaic.version = 11 : i64} {
  func.func @_gru_gate_kernel(%arg0: i32, %arg1: memref<16x128xf32, #tpu.memory_space<vmem>>, %arg2: memref<16x128xf32, #tpu.memory_space<vmem>>, %arg3: memref<128x384xbf16, #tpu.memory_space<vmem>>, %arg4: memref<1x128xf32, #tpu.memory_space<vmem>>, %arg5: memref<128x256xbf16, #tpu.memory_space<vmem>>, %arg6: memref<128x128xbf16, #tpu.memory_space<vmem>>, %arg7: memref<16x128xf32, #tpu.memory_space<vmem>>) attributes {dimension_semantics = [#tpu.dimension_semantics<parallel>], iteration_bounds = array<i64: 1>, scalar_prefetch = 0 : i64, scratch_operands = 0 : i64, tpu.core_type = #tpu.core_type<tc>, window_params = [{transform_indices = @transform_0, window_bounds = array<i64: 16, 128>}, {transform_indices = @transform_1, window_bounds = array<i64: 16, 128>}, {pipeline_mode = #tpu.pipeline_mode<synchronous>, transform_indices = @transform_2, window_bounds = array<i64: 128, 384>}, {pipeline_mode = #tpu.pipeline_mode<synchronous>, transform_indices = @transform_3, window_bounds = array<i64: 1, 128>}, {pipeline_mode = #tpu.pipeline_mode<synchronous>, transform_indices = @transform_4, window_bounds = array<i64: 128, 256>}, {pipeline_mode = #tpu.pipeline_mode<synchronous>, transform_indices = @transform_5, window_bounds = array<i64: 128, 128>}, {transform_indices = @transform_6, window_bounds = array<i64: 16, 128>}]} {
    %c0 = arith.constant 0 : index
    %c0_0 = arith.constant 0 : index
    %0 = vector.load %arg1[%c0, %c0_0] : memref<16x128xf32, #tpu.memory_space<vmem>>, vector<16x128xf32>
    %c0_1 = arith.constant 0 : index
    %c0_2 = arith.constant 0 : index
    %1 = vector.load %arg1[%c0_1, %c0_2] : memref<16x128xf32, #tpu.memory_space<vmem>>, vector<16x128xf32>
    %2 = arith.truncf %1 : vector<16x128xf32> to vector<16x128xbf16>
    %c0_3 = arith.constant 0 : index
    %c0_4 = arith.constant 0 : index
    %3 = vector.load %arg2[%c0_3, %c0_4] : memref<16x128xf32, #tpu.memory_space<vmem>>, vector<16x128xf32>
    %4 = arith.truncf %3 : vector<16x128xf32> to vector<16x128xbf16>
    %c0_5 = arith.constant 0 : index
    %c0_6 = arith.constant 0 : index
    %5 = vector.load %arg3[%c0_5, %c0_6] : memref<128x384xbf16, #tpu.memory_space<vmem>>, vector<128x384xbf16>
    %cst = arith.constant dense<0.000000e+00> : vector<16x384xf32>
    %6 = tpu.matmul %4, %5, %cst {dimension_numbers = #tpu.dot_dimension_numbers<[1], [0], [0], [1], [0, 0, 1, 1], [], []>} : vector<16x128xbf16>, vector<128x384xbf16>, vector<16x384xf32> -> vector<16x384xf32>
    %c0_7 = arith.constant 0 : index
    %c0_8 = arith.constant 0 : index
    %7 = vector.load %arg5[%c0_7, %c0_8] : memref<128x256xbf16, #tpu.memory_space<vmem>>, vector<128x256xbf16>
    %cst_9 = arith.constant dense<0.000000e+00> : vector<16x256xf32>
    %8 = tpu.matmul %2, %7, %cst_9 {dimension_numbers = #tpu.dot_dimension_numbers<[1], [0], [0], [1], [0, 0, 1, 1], [], []>} : vector<16x128xbf16>, vector<128x256xbf16>, vector<16x256xf32> -> vector<16x256xf32>
    %9 = vector.extract_strided_slice %6 {offsets = [0, 0], sizes = [16, 128], strides = [1, 1]} : vector<16x384xf32> to vector<16x128xf32>
    %10 = vector.extract_strided_slice %8 {offsets = [0, 0], sizes = [16, 128], strides = [1, 1]} : vector<16x256xf32> to vector<16x128xf32>
    %11 = arith.addf %9, %10 : vector<16x128xf32>
    %c0_10 = arith.constant 0 : index
    %c0_11 = arith.constant 0 : index
    %12 = vector.load %arg4[%c0_10, %c0_11] : memref<1x128xf32, #tpu.memory_space<vmem>>, vector<1x128xf32>
    %13 = vector.broadcast %12 : vector<1x128xf32> to vector<16x128xf32>
    %14 = arith.addf %11, %13 : vector<16x128xf32>
    %15 = arith.negf %14 : vector<16x128xf32>
    %16 = math.exp %15 : vector<16x128xf32>
    %cst_12 = arith.constant 1.000000e+00 : f32
    %17 = vector.broadcast %cst_12 : f32 to vector<16x128xf32>
    %18 = arith.addf %17, %16 : vector<16x128xf32>
    %19 = arith.divf %17, %18 : vector<16x128xf32>
    %20 = vector.extract_strided_slice %6 {offsets = [0, 128], sizes = [16, 128], strides = [1, 1]} : vector<16x384xf32> to vector<16x128xf32>
    %21 = vector.extract_strided_slice %8 {offsets = [0, 128], sizes = [16, 128], strides = [1, 1]} : vector<16x256xf32> to vector<16x128xf32>
    %22 = arith.addf %20, %21 : vector<16x128xf32>
    %23 = arith.negf %22 : vector<16x128xf32>
    %24 = math.exp %23 : vector<16x128xf32>
    %cst_13 = arith.constant 1.000000e+00 : f32
    %25 = vector.broadcast %cst_13 : f32 to vector<16x128xf32>
    %26 = arith.addf %25, %24 : vector<16x128xf32>
    %27 = arith.divf %25, %26 : vector<16x128xf32>
    %28 = vector.extract_strided_slice %6 {offsets = [0, 256], sizes = [16, 128], strides = [1, 1]} : vector<16x384xf32> to vector<16x128xf32>
    %29 = arith.mulf %27, %0 : vector<16x128xf32>
    %30 = arith.truncf %29 : vector<16x128xf32> to vector<16x128xbf16>
    %c0_14 = arith.constant 0 : index
    %c0_15 = arith.constant 0 : index
    %31 = vector.load %arg6[%c0_14, %c0_15] : memref<128x128xbf16, #tpu.memory_space<vmem>>, vector<128x128xbf16>
    %cst_16 = arith.constant dense<0.000000e+00> : vector<16x128xf32>
    %32 = tpu.matmul %30, %31, %cst_16 {dimension_numbers = #tpu.dot_dimension_numbers<[1], [0], [0], [1], [0, 0, 1, 1], [], []>} : vector<16x128xbf16>, vector<128x128xbf16>, vector<16x128xf32> -> vector<16x128xf32>
    %33 = arith.addf %28, %32 : vector<16x128xf32>
    %34 = math.tanh %33 : vector<16x128xf32>
    %cst_17 = arith.constant 1.000000e+00 : f32
    %35 = vector.broadcast %cst_17 : f32 to vector<16x128xf32>
    %36 = arith.subf %35, %19 : vector<16x128xf32>
    %37 = arith.mulf %36, %0 : vector<16x128xf32>
    %38 = arith.mulf %19, %34 : vector<16x128xf32>
    %39 = arith.addf %37, %38 : vector<16x128xf32>
    %c0_18 = arith.constant 0 : index
    %c0_19 = arith.constant 0 : index
    %40 = vector.load %arg7[%c0_18, %c0_19] : memref<16x128xf32, #tpu.memory_space<vmem>>, vector<16x128xf32>
    tpu.vector_store %arg7[%c0_18, %c0_19], %39 {strides = array<i32>} : memref<16x128xf32, #tpu.memory_space<vmem>>, vector<16x128xf32>,
    return
  }
  func.func @transform_0(%arg0: i32) -> (i32, i32) {
    %c0_i32 = arith.constant 0 : i32
    %c0_i32_0 = arith.constant 0 : i32
    return %arg0, %c0_i32 : i32, i32
  }
  func.func @transform_1(%arg0: i32) -> (i32, i32) {
    %c0_i32 = arith.constant 0 : i32
    %c0_i32_0 = arith.constant 0 : i32
    return %arg0, %c0_i32 : i32, i32
  }
  func.func @transform_2(%arg0: i32) -> (i32, i32) {
    %c0_i32 = arith.constant 0 : i32
    %c0_i32_0 = arith.constant 0 : i32
    %c0_i32_1 = arith.constant 0 : i32
    return %c0_i32, %c0_i32_0 : i32, i32
  }
  func.func @transform_3(%arg0: i32) -> (i32, i32) {
    %c0_i32 = arith.constant 0 : i32
    %c0_i32_0 = arith.constant 0 : i32
    %c0_i32_1 = arith.constant 0 : i32
    return %c0_i32, %c0_i32_0 : i32, i32
  }
  func.func @transform_4(%arg0: i32) -> (i32, i32) {
    %c0_i32 = arith.constant 0 : i32
    %c0_i32_0 = arith.constant 0 : i32
    %c0_i32_1 = arith.constant 0 : i32
    return %c0_i32, %c0_i32_0 : i32, i32
  }
  func.func @transform_5(%arg0: i32) -> (i32, i32) {
    %c0_i32 = arith.constant 0 : i32
    %c0_i32_0 = arith.constant 0 : i32
    %c0_i32_1 = arith.constant 0 : i32
    return %c0_i32, %c0_i32_0 : i32, i32
  }
  func.func @transform_6(%arg0: i32) -> (i32, i32) {
    %c0_i32 = arith.constant 0 : i32
    %c0_i32_0 = arith.constant 0 : i32
    return %arg0, %c0_i32 : i32, i32
  }
}

</mosaic_0001>

<bundles_post_ra>
// kernel: tpu_custom_call.1
= control target key start
LH: loop header
LB: loop body
LE: loop exit
PB: predicated region body
PF: predicated region fallthrough
CT: control target
= control target key end

     0   :  { %11 = vsyncpa [#allocation3], 0  ;;  %s1197_s0 = inlined_call_operand.hbm [shape: f32[16,128], index: 0, kind: input, shape index: {}]   ;;  %s1198_s1 = inlined_call_operand.hbm [shape: f32[16,128], index: 1, kind: input, shape index: {}]   ;;  %s1199_s2 = inlined_call_operand.hbm [shape: bf16[128,384], index: 2, kind: input, shape index: {}]   ;;  %s1200_s3 = inlined_call_operand.vmem [shape: f32[1,128], index: 3, kind: input, shape index: {}]   ;;  %s1201_s4 = inlined_call_operand.hbm [shape: bf16[128,256], index: 4, kind: input, shape index: {}]   ;;  %s1202_s5 = inlined_call_operand.hbm [shape: bf16[128,128], index: 5, kind: input, shape index: {}]   ;;  %s1203_s6 = inlined_call_operand.hbm [shape: f32[16,128], index: 6, kind: output, shape index: {}]  }
   0x1   :  { %12 = vsyncpa [#allocation6], 0 }
   0x2   :  { %13 = vsyncpa [#allocation9], 0 }
   0x3   :  { %14 = vsyncpa [#allocation4], 0  ;;  %s1018_s21 = smov [#allocation5]   ;;  %s1019_s23 = smov [#allocation8]  }
   0x4   :  { %s32_s22 = sshll.u32 %s1018_s21, 4  ;;  %s58_s24 = sshll.u32 %s1019_s23, 4  ;;  %s33_s22 = int_to_ptr.vmem [resolvable:$true] %s32_s22  ;;  %s1068_s24 = int_to_ptr.vmem [resolvable:$true] %s58_s24 }
   0x5   :  { %s878_s27 = scalar_lea.hbm %s1198_s1, 256 }
   0x6   :  { %p879_p0 = scmp.ne.s32.totalorder %s1198_s1, %s878_s27  ;;  %p882_p1 = scmp.lt.u32.totalorder %s878_s27, %s1198_s1 }
   0x8   :  { %p884_p2 = pnand %p882_p1, %p879_p0 }
   0xa   :  { %887 = shalt.err (!%p884_p2)
}
   0xb   :  { %s888_s8 = scalar_lea.vmem %s33_s22, 256  ;;  %p893_p4 = scmp.lt.s32.totalorder %s33_s22, %s33_s22 }
   0xc   :  { %p889_p3 = scmp.ne.s32.totalorder %s33_s22, %s888_s8  ;;  %p894_p5 = scmp.lt.s32.totalorder %s888_s8, %s888_s8 }
   0xe   :  { %p895_p6 = por %p894_p5, %p893_p4 }
  0x10   :  { %p896_p7 = pnand %p895_p6, %p889_p3 }
  0x12   :  { %899 = shalt.err (!%p896_p7)
}
  0x13   :  { %s1020_s9 = smov 128   ;;  %s1021_s10 = smov 8  }
  0x14   :  { %38 = dma.hbm_to_vmem [thread:$0]  %s1198_s1, 256, %s33_s22, [#allocation6], %s1020_s9, %s1020_s9, %s1021_s10  }
  0x15   :  { %s900_s15 = scalar_lea.hbm %s1201_s4, 2048 }
  0x16   :  { %p901_p8 = scmp.ne.s32.totalorder %s1201_s4, %s900_s15  ;;  %p904_p9 = scmp.lt.u32.totalorder %s900_s15, %s1201_s4 }
  0x18   :  { %p906_p10 = pnand %p904_p9, %p901_p8 }
  0x1a   :  { %909 = shalt.err (!%p906_p10)
}
  0x1b   :  { %s910_s20 = scalar_lea.vmem %s1068_s24, 2048  ;;  %p915_p12 = scmp.lt.s32.totalorder %s1068_s24, %s1068_s24 }
  0x1c   :  { %p911_p11 = scmp.ne.s32.totalorder %s1068_s24, %s910_s20  ;;  %p916_p13 = scmp.lt.s32.totalorder %s910_s20, %s910_s20 }
  0x1e   :  { %p917_p0 = por %p916_p13, %p915_p12 }
  0x20   :  { %p918_p1 = pnand %p917_p0, %p911_p11 }
  0x22   :  { %921 = shalt.err (!%p918_p1)
}
  0x23   :  { %64 = dma.hbm_to_vmem [thread:$0]  %s1201_s4, 2048, %s1068_s24, [#allocation9], %s1020_s9, %s1020_s9, %s1021_s10  }
  0x24   :  { %s1022_s22 = smov [#allocation2]   ;;  %s1023_s25 = smov [#allocation7]  }
  0x25   :  { %s20_s23 = sshll.u32 %s1022_s22, 4  ;;  %s44_s26 = sshll.u32 %s1023_s25, 4  ;;  %s21_s23 = int_to_ptr.vmem [resolvable:$true] %s20_s23  ;;  %s1105_s26 = int_to_ptr.vmem [resolvable:$true] %s44_s26 }
  0x26   :  { %s922_s29 = scalar_lea.hbm %s1197_s0, 256 }
  0x27   :  { %p923_p2 = scmp.ne.s32.totalorder %s1197_s0, %s922_s29  ;;  %p926_p3 = scmp.lt.u32.totalorder %s922_s29, %s1197_s0 }
  0x29   :  { %p928_p4 = pnand %p926_p3, %p923_p2 }
  0x2b   :  { %931 = shalt.err (!%p928_p4)
}
  0x2c   :  { %s932_s4 = scalar_lea.vmem %s21_s23, 256  ;;  %p937_p6 = scmp.lt.s32.totalorder %s21_s23, %s21_s23 }
  0x2d   :  { %p933_p5 = scmp.ne.s32.totalorder %s21_s23, %s932_s4  ;;  %p938_p7 = scmp.lt.s32.totalorder %s932_s4, %s932_s4 }
  0x2f   :  { %p939_p8 = por %p938_p7, %p937_p6 }
  0x31   :  { %p940_p9 = pnand %p939_p8, %p933_p5 }
  0x33   :  { %943 = shalt.err (!%p940_p9)
}
  0x34   :  { %26 = dma.hbm_to_vmem [thread:$0]  %s1197_s0, 256, %s21_s23, [#allocation3], %s1020_s9, %s1020_s9, %s1021_s10  }
  0x35   :  { %s944_s15 = scalar_lea.hbm %s1199_s2, 3072 }
  0x36   :  { %p945_p10 = scmp.ne.s32.totalorder %s1199_s2, %s944_s15  ;;  %p948_p11 = scmp.lt.u32.totalorder %s944_s15, %s1199_s2 }
  0x38   :  { %p950_p12 = pnand %p948_p11, %p945_p10 }
  0x3a   :  { %953 = shalt.err (!%p950_p12)
}
  0x3b   :  { %s954_s20 = scalar_lea.vmem %s1105_s26, 3072  ;;  %p959_p0 = scmp.lt.s32.totalorder %s1105_s26, %s1105_s26 }
  0x3c   :  { %p955_p13 = scmp.ne.s32.totalorder %s1105_s26, %s954_s20  ;;  %p960_p1 = scmp.lt.s32.totalorder %s954_s20, %s954_s20 }
  0x3e   :  { %p961_p2 = por %p960_p1, %p959_p0 }
  0x40   :  { %p962_p3 = pnand %p961_p2, %p955_p13 }
  0x42   :  { %965 = shalt.err (!%p962_p3)
}
  0x43   :  { %s1024_s0 = smov 192   ;;  %s1025_s1 = smov 12  }
  0x44   :  { %50 = dma.hbm_to_vmem [thread:$0]  %s1199_s2, 3072, %s1105_s26, [#allocation6], %s1024_s0, %s1024_s0, %s1025_s1  }
  0x45   :  { %s1026_s23 = smov [#allocation10]   ;;  %s966_s29 = scalar_lea.hbm %s1202_s5, 1024 }
  0x46   :  { %s70_s25 = sshll.u32 %s1026_s23, 4  ;;  %p967_p4 = scmp.ne.s32.totalorder %s1202_s5, %s966_s29  ;;  %s71_s25 = int_to_ptr.vmem [resolvable:$true] %s70_s25 }
  0x47   :  { %p970_p5 = scmp.lt.u32.totalorder %s966_s29, %s1202_s5 }
  0x49   :  { %p972_p6 = pnand %p970_p5, %p967_p4 }
  0x4b   :  { %975 = shalt.err (!%p972_p6)
}
  0x4c   :  { %s976_s4 = scalar_lea.vmem %s71_s25, 1024  ;;  %p981_p8 = scmp.lt.s32.totalorder %s71_s25, %s71_s25 }
  0x4d   :  { %p977_p7 = scmp.ne.s32.totalorder %s71_s25, %s976_s4  ;;  %p982_p9 = scmp.lt.s32.totalorder %s976_s4, %s976_s4 }
  0x4f   :  { %p983_p10 = por %p982_p9, %p981_p8 }
  0x51   :  { %p984_p11 = pnand %p983_p10, %p977_p7 }
  0x53   :  { %987 = shalt.err (!%p984_p11)
}
  0x54   :  { %s1027_s2 = smov 64   ;;  %s1028_s26 = smov 4  }
  0x55   :  { %76 = dma.hbm_to_vmem [thread:$0]  %s1202_s5, 1024, %s71_s25, [#allocation9], %s1027_s2, %s1027_s2, %s1028_s26  }
  0x56   :  { %1010 = dma.done.wait [#allocation3], 256  }
  0x57   :  { %1011 = vsyncadd [#allocation3], 4294967040 }
  0x58   :  { %1012 = dma.done.wait [#allocation6], 3328  }
  0x59   :  { %1013 = vsyncadd [#allocation6], 4294963968 }
  0x5a   :  { %1014 = dma.done.wait [#allocation9], 3072  }
  0x5b   :  { %1015 = vsyncadd [#allocation9], 4294964224  ;;  %v1029_v0 = vmov 0   ;;  %v1030_v1 = vmov 0.0   ;;  %v794_v2 = vld [vmem:[#allocation7 + $0x4] ss:$12 sps:$4 sm:$0xff]  }
  0x5c   :  { %291 = vmatprep.mubr.bf16.mxu0 %v1029_v0  ;;  %731 = vmatprep.subr.bf16.mxu1 %v1030_v1  ;;  %v796_v3 = vld [vmem:[#allocation7] ss:$12 sps:$4 sm:$0xff]   ;;  %v797_v4 = vld [vmem:[#allocation7 + $0x1c] ss:$12 sps:$4 sm:$0xff]   ;;  %v799_v5 = vld [vmem:[#allocation7 + $0x18] ss:$12 sps:$4 sm:$0xff]  }
  0x5d   :  { %259 = vmatprep.subr.bf16.mxu0 %v794_v2  ;;  %v800_v6 = vld [vmem:[#allocation7 + $0x34] ss:$12 sps:$4 sm:$0xff]   ;;  %v802_v7 = vld [vmem:[#allocation7 + $0x30] ss:$12 sps:$4 sm:$0xff]   ;;  %v803_v8 = vld [vmem:[#allocation7 + $0x4c] ss:$12 sps:$4 sm:$0xff]  }
  0x5e   :  { %260 = vmatpush1.bf16.msra.mxu0 %v796_v3  ;;  %v805_v9 = vld [vmem:[#allocation7 + $0x48] ss:$12 sps:$4 sm:$0xff]   ;;  %v806_v10 = vld [vmem:[#allocation7 + $0x64] ss:$12 sps:$4 sm:$0xff]   ;;  %v808_v11 = vld [vmem:[#allocation7 + $0x60] ss:$12 sps:$4 sm:$0xff]  }
  0x5f   :  { %261 = vmatprep.subr.bf16.mxu0 %v797_v4  ;;  %v809_v12 = vld [vmem:[#allocation7 + $0x7c] ss:$12 sps:$4 sm:$0xff]   ;;  %v811_v13 = vld [vmem:[#allocation7 + $0x78] ss:$12 sps:$4 sm:$0xff]   ;;  %v812_v14 = vld [vmem:[#allocation7 + $0x94] ss:$12 sps:$4 sm:$0xff]  }
  0x60   :  { %v814_v15 = vld [vmem:[#allocation7 + $0x90] ss:$12 sps:$4 sm:$0xff]   ;;  %v842_v16 = vld [vmem:[#allocation7 + $0x8] ss:$12 sps:$4 sm:$0xff]   ;;  %v815_v17 = vld [vmem:[#allocation7 + $0xac] ss:$12 sps:$4 sm:$0xff]  }
  0x61   :  { %v817_v18 = vld [vmem:[#allocation7 + $0xa8] ss:$12 sps:$4 sm:$0xff]   ;;  %732 = vmatpush3.bf16.msra.mxu1 %v842_v16  ;;  %v843_v19 = vld [vmem:[#allocation7 + $0x20] ss:$12 sps:$4 sm:$0xff]   ;;  %v97_v21 = vld [vmem:[#allocation5 + $0x8] sm:$0xff]  ;;  %vm1031_vm0 = vmmov 0  }
  0x62   :  { %262 = vmatpush1.bf16.msra.mxu0 %v799_v5  ;;  %v96_v20 = vld [vmem:[#allocation5] sm:$0xff]  ;;  %733 = vmatprep.subr.bf16.mxu1 %v1030_v1  ;;  %v820_v22 = vld [vmem:[#allocation8 + $0x4] ss:$8 sps:$4 sm:$0xff]   ;;  %v818_v23 = vld [vmem:[#allocation8] ss:$8 sps:$4 sm:$0xff]  }
  0x63   :  { %263 = vmatprep.subr.bf16.mxu0 %v800_v6  ;;  %v844_v24 = vld [vmem:[#allocation7 + $0x38] ss:$12 sps:$4 sm:$0xff]   ;;  %v98_v25 = vpack.c.bf16 %v97_v21, %v96_v20  ;;  %v823_v26 = vld [vmem:[#allocation8 + $0x14] ss:$8 sps:$4 sm:$0xff]   ;;  %v824_v31 = vld [vmem:[#allocation8 + $0x20] ss:$8 sps:$4 sm:$0xff]   ;;  %747 = vmatprep.mubr.msk.bf16.mxu1 %vm1031_vm0, %v1030_v1 }
  0x64   :  { %v845_v27 = vld [vmem:[#allocation7 + $0x50] ss:$12 sps:$4 sm:$0xff]   ;;  %v826_v29 = vld [vmem:[#allocation8 + $0x24] ss:$8 sps:$4 sm:$0xff]   ;;  %v846_v30 = vld [vmem:[#allocation7 + $0x68] ss:$12 sps:$4 sm:$0xff]  }
  0x65   :  { %734 = vmatpush3.bf16.msra.mxu1 %v843_v19  ;;  %v821_v28 = vld [vmem:[#allocation8 + $0x10] ss:$8 sps:$4 sm:$0xff]   ;;  %v829_v32 = vld [vmem:[#allocation8 + $0x34] ss:$8 sps:$4 sm:$0xff]   ;;  %v847_v33 = vld [vmem:[#allocation7 + $0x80] ss:$12 sps:$4 sm:$0xff]  }
  0x66   :  { %264 = vmatpush1.bf16.msra.mxu0 %v802_v7  ;;  %735 = vmatprep.subr.bf16.mxu1 %v1030_v1  ;;  %v827_v34 = vld [vmem:[#allocation8 + $0x30] ss:$8 sps:$4 sm:$0xff]   ;;  %v832_v35 = vld [vmem:[#allocation8 + $0x44] ss:$8 sps:$4 sm:$0xff]   ;;  %v830_v37 = vld [vmem:[#allocation8 + $0x40] ss:$8 sps:$4 sm:$0xff]  }
  0x67   :  { %265 = vmatprep.subr.bf16.mxu0 %v803_v8  ;;  %v848_v36 = vld [vmem:[#allocation7 + $0x98] ss:$12 sps:$4 sm:$0xff]   ;;  %v835_v38 = vld [vmem:[#allocation8 + $0x54] ss:$8 sps:$4 sm:$0xff]   ;;  %v836_v42 = vld [vmem:[#allocation8 + $0x60] ss:$8 sps:$4 sm:$0xff]  }
  0x68   :  { %v849_v39 = vld [vmem:[#allocation7 + $0xb0] ss:$12 sps:$4 sm:$0xff]   ;;  %v838_v41 = vld [vmem:[#allocation8 + $0x64] ss:$8 sps:$4 sm:$0xff]   ;;  %v700_v7 = vld [vmem:[%s1200_s3] ss:$0 sm:$0xff] }
  0x69   :  { %736 = vmatpush3.bf16.msra.mxu1 %v844_v24  ;;  %v833_v40 = vld [vmem:[#allocation8 + $0x50] ss:$8 sps:$4 sm:$0xff]   ;;  %v841_v43 = vld [vmem:[#allocation8 + $0x74] ss:$8 sps:$4 sm:$0xff]   ;;  %v1160_v45 = vld [vmem:[#allocation2] sm:$0xff]  ;;  %s1032_s3 = smov [#allocation11]  }
  0x6a   :  { %266 = vmatpush1.bf16.msra.mxu0 %v805_v9  ;;  %737 = vmatprep.subr.bf16.mxu1 %v1030_v1  ;;  %v839_v44 = vld [vmem:[#allocation8 + $0x70] ss:$8 sps:$4 sm:$0xff]   ;;  %v1162_v46 = vld [vmem:[#allocation2 + $0x8] sm:$0xff]  ;;  %v850_v48 = vld [vmem:[#allocation10] sm:$0xff]   ;;  %s646_s14 = sshll.u32 %s1032_s3, 4  ;;  %s647_s14 = int_to_ptr.vmem [resolvable:$true] %s646_s14 }
  0x6b   :  { %267 = vmatprep.subr.bf16.mxu0 %v806_v10  ;;  %v95_v47 = vpack.c.bf16 %v1162_v46, %v1160_v45  ;;  %v851_v49 = vld [vmem:[#allocation10 + $0x8] sm:$0xff]   ;;  %v852_v50 = vld [vmem:[#allocation10 + $0x10] sm:$0xff]   ;;  %v853_v51 = vld [vmem:[#allocation10 + $0x18] sm:$0xff]   ;;  %s988_s15 = scalar_lea.vmem %s647_s14, 256  ;;  %p993_p13 = scmp.lt.s32.totalorder %s647_s14, %s647_s14 }
  0x6c   :  { %v854_v52 = vld [vmem:[#allocation10 + $0x20] sm:$0xff]   ;;  %v855_v53 = vld [vmem:[#allocation10 + $0x28] sm:$0xff]   ;;  %v856_v54 = vld [vmem:[#allocation10 + $0x30] sm:$0xff]   ;;  %p989_p12 = scmp.ne.s32.totalorder %s647_s14, %s988_s15  ;;  %p994_p0 = scmp.lt.s32.totalorder %s988_s15, %s988_s15 }
  0x6d   :  { %738 = vmatpush3.bf16.msra.mxu1 %v845_v27  ;;  %v857_v55 = vld [vmem:[#allocation10 + $0x38] sm:$0xff]  }
  0x6e   :  { %268 = vmatpush1.bf16.msra.mxu0 %v808_v11  ;;  %739 = vmatprep.subr.bf16.mxu1 %v1030_v1  ;;  %p995_p1 = por %p994_p0, %p993_p13 }
  0x6f   :  { %269 = vmatprep.subr.bf16.mxu0 %v809_v12 }
  0x70   :  { %p996_p2 = pnand %p995_p1, %p989_p12 }
  0x71   :  { %740 = vmatpush3.bf16.msra.mxu1 %v846_v30 }
  0x72   :  { %270 = vmatpush1.bf16.msra.mxu0 %v811_v13  ;;  %741 = vmatprep.subr.bf16.mxu1 %v1030_v1 }
  0x73   :  { %271 = vmatprep.subr.bf16.mxu0 %v812_v14 }
  0x75   :  { %742 = vmatpush3.bf16.msra.mxu1 %v847_v33 }
  0x76   :  { %272 = vmatpush1.bf16.msra.mxu0 %v814_v15  ;;  %743 = vmatprep.subr.bf16.mxu1 %v1030_v1 }
  0x77   :  { %273 = vmatprep.subr.bf16.mxu0 %v815_v17 }
  0x79   :  { %744 = vmatpush3.bf16.msra.mxu1 %v848_v36 }
  0x7a   :  { %274 = vmatpush1.bf16.msra.mxu0 %v817_v18  ;;  %745 = vmatprep.subr.bf16.mxu1 %v1030_v1 }
  0x7b   :  { %439 = vmatprep.subr.bf16.mxu0 %v820_v22 }
  0x7d   :  { %292 = vmatmul.mubr.bf16.vlgmr.msra.gmra.mrb[0].mxu0 %v98_v25  ;;  %746 = vmatpush3.bf16.msra.mxu1 %v849_v39 }
  0x7e   :  { %440 = vmatpush1.bf16.msra.mxu0 %v818_v23  ;;  %471 = vmatprep.mubr.bf16.mxu0 %v1029_v0 }
  0x7f   :  { %441 = vmatprep.subr.bf16.mxu0 %v823_v26  ;;  %751 = vmatprep.subr.bf16.mxu1 %v1030_v1 }
  0x80   :  { %748 = vmatmul.mubr.bf16.vlgmr.msra.gmra.mrb[0].mxu1 %v98_v25 }
  0x81   :  { %752 = vmatpush3.bf16.msra.mxu1 %v850_v48  ;;  %767 = vmatprep.mubr.msk.bf16.mxu1 %vm1031_vm0, %v1030_v1 }
  0x82   :  { %442 = vmatpush1.bf16.msra.mxu0 %v821_v28  ;;  %753 = vmatprep.subr.bf16.mxu1 %v1030_v1 }
  0x83   :  { %443 = vmatprep.subr.bf16.mxu0 %v826_v29 }
  0x85   :  { %754 = vmatpush3.bf16.msra.mxu1 %v851_v49 }
  0x86   :  { %444 = vmatpush1.bf16.msra.mxu0 %v824_v31  ;;  %755 = vmatprep.subr.bf16.mxu1 %v1030_v1 }
  0x87   :  { %445 = vmatprep.subr.bf16.mxu0 %v829_v32 }
  0x89   :  { %756 = vmatpush3.bf16.msra.mxu1 %v852_v50 }
  0x8a   :  { %446 = vmatpush1.bf16.msra.mxu0 %v827_v34  ;;  %757 = vmatprep.subr.bf16.mxu1 %v1030_v1 }
  0x8b   :  { %447 = vmatprep.subr.bf16.mxu0 %v832_v35 }
  0x8d   :  { %758 = vmatpush3.bf16.msra.mxu1 %v853_v51 }
  0x8e   :  { %448 = vmatpush1.bf16.msra.mxu0 %v830_v37  ;;  %759 = vmatprep.subr.bf16.mxu1 %v1030_v1 }
  0x8f   :  { %449 = vmatprep.subr.bf16.mxu0 %v835_v38 }
  0x91   :  { %760 = vmatpush3.bf16.msra.mxu1 %v854_v52 }
  0x92   :  { %450 = vmatpush1.bf16.msra.mxu0 %v833_v40  ;;  %761 = vmatprep.subr.bf16.mxu1 %v1030_v1 }
  0x93   :  { %451 = vmatprep.subr.bf16.mxu0 %v838_v41 }
  0x95   :  { %762 = vmatpush3.bf16.msra.mxu1 %v855_v53 }
  0x96   :  { %452 = vmatpush1.bf16.msra.mxu0 %v836_v42  ;;  %763 = vmatprep.subr.bf16.mxu1 %v1030_v1 }
  0x97   :  { %453 = vmatprep.subr.bf16.mxu0 %v841_v43 }
  0x99   :  { %764 = vmatpush3.bf16.msra.mxu1 %v856_v54 }
  0x9a   :  { %454 = vmatpush1.bf16.msra.mxu0 %v839_v44  ;;  %765 = vmatprep.subr.bf16.mxu1 %v1030_v1 }
  0x9d   :  { %472 = vmatmul.mubr.bf16.vlgmr.msra.gmra.mrb[0].mxu0 %v95_v47  ;;  %766 = vmatpush3.bf16.msra.mxu1 %v857_v55 }
 0x170   :  { %v473_v56 = vpop.f32.mrb[0].mxu0 }
 0x171   :  { %v475_v57 = vpop.f32.mrb[1].mxu0  ;;  %v491_v8 = vadd.f32 %v700_v7, %v473_v56 }
 0x172   :  { %v703_v58 = vmul.f32 -1.442695, %v475_v57  ;;  %v477_v59 = vpop.f32.mrb[2].mxu0 }
 0x173   :  { %v479_v60 = vpop.f32.mrb[3].mxu0  ;;  %v492_v9 = vadd.f32 %v700_v7, %v477_v59  ;;  %v701_v10 = vmul.f32 -1.442695, %v491_v8 }
 0x174   :  { %858 = vpow2.f32 %v703_v58  ;;  %v704_v61 = vmul.f32 -1.442695, %v479_v60 }
 0x175   :  { %v702_v11 = vmul.f32 -1.442695, %v492_v9 }
 0x176   :  { %860 = vpow2.f32 %v704_v61 }
 0x17e   :  { %v859_v62 = vpop.eup %858 }
 0x17f   :  { %v513_v63 = vadd.f32 1.0, %v859_v62 }
 0x180   :  { %v861_v0 = vpop.eup %860 }
 0x181   :  { %862 = vrcp.f32 %v513_v63  ;;  %v514_v2 = vadd.f32 1.0, %v861_v0 }
 0x183   :  { %864 = vrcp.f32 %v514_v2 }
 0x184   :  { %866 = vpow2.f32 %v701_v10 }
 0x185   :  { %868 = vpow2.f32 %v702_v11 }
 0x18b   :  { %v863_v3 = vpop.eup %862 }
 0x18c   :  { %v519_v5 = vmul.f32 %v863_v3, %v1160_v45 }
 0x18d   :  { %v865_v4 = vpop.eup %864 }
 0x18e   :  { %v520_v1 = vmul.f32 %v865_v4, %v1162_v46  ;;  %v867_v12 = vpop.eup %866 }
 0x18f   :  { %v869_v13 = vpop.eup %868  ;;  %v499_v14 = vadd.f32 1.0, %v867_v12 }
 0x190   :  { %v521_v6 = vpack.c.bf16 %v520_v1, %v519_v5  ;;  %v500_v15 = vadd.f32 1.0, %v869_v13 }
 0x191   :  { %870 = vrcp.f32 %v499_v14 }
 0x192   :  { %768 = vmatmul.mubr.bf16.vlgmr.msra.gmra.mrb[0].mxu1 %v521_v6  ;;  %872 = vrcp.f32 %v500_v15 }
 0x19b   :  { %v871_v20 = vpop.eup %870 }
 0x19c   :  { %v873_v21 = vpop.eup %872  ;;  %v631_v22 = vsub.f32 1.0, %v871_v20 }
 0x19d   :  { %v632_v23 = vsub.f32 1.0, %v873_v21 }
 0x19e   :  { %v633_v25 = vmul.f32 %v631_v22, %v1160_v45 }
 0x19f   :  { %v634_v28 = vmul.f32 %v632_v23, %v1162_v46 }
 0x265   :  { %v620_v16 = vpop.f32.mrb[0].mxu1 }
 0x266   :  { %874 = vtanh.f32 %v620_v16  ;;  %v769_v17 = vpop.f32.mrb[1].mxu1 }
 0x267   :  { %v623_v18 = vpop.f32.mrb[2].mxu1 }
 0x268   :  { %876 = vtanh.f32 %v623_v18  ;;  %v770_v19 = vpop.f32.mrb[3].mxu1 }
 0x270   :  { %v875_v24 = vpop.eup %874 }
 0x271   :  { %v635_v26 = vmul.f32 %v875_v24, %v871_v20 }
 0x272   :  { %v877_v27 = vpop.eup %876 }
 0x273   :  { %v636_v29 = vmul.f32 %v877_v27, %v873_v21  ;;  %v637_v30 = vadd.f32 %v635_v26, %v633_v25 }
 0x275   :  { %v638_v31 = vadd.f32 %v636_v29, %v634_v28  ;;  %639 = vst [vmem:[#allocation11] sm:$0xff] %v637_v30 }
 0x277   :  { %640 = vst [vmem:[#allocation11 + $0x8] sm:$0xff] %v638_v31 }
 0x278   :  { %999 = shalt.err (!%p996_p2)
}
 0x279   :  { %s1000_s18 = scalar_lea.hbm %s1203_s6, 256 }
 0x27a   :  { %p1001_p3 = scmp.ne.s32.totalorder %s1203_s6, %s1000_s18  ;;  %p1004_p4 = scmp.lt.u32.totalorder %s1000_s18, %s1203_s6 }
 0x27c   :  { %p1006_p5 = pnand %p1004_p4, %p1001_p3 }
 0x27e   :  { %1009 = shalt.err (!%p1006_p5)
}
 0x27f   :  { %652 = dma.vmem_to_hbm [thread:$0]  %s647_s14, 256, %s1203_s6, [#allocation4], %s1020_s9, %s1020_s9, %s1021_s10  }
 0x280   :  { %1016 = dma.done.wait [#allocation4], 256  }
 0x281   :  { %1017 = vsyncadd [#allocation4], 4294967040 }
 0x282   :  { %656 = vsyncpa [#allocation3], 1 }
 0x283   :  { %657 = vsyncpa [#allocation6], 1 }
 0x284   :  { %658 = vsyncpa [#allocation9], 1 }
 0x285   :  { %659 = vsyncpa [#allocation4], 1 }

</bundles_post_ra>
